<compile_context>
chip_gen: v7x
topology: tpu7x:2x2x1
jax: 0.10.0
libtpu: 0.0.40
codegen_flags: <defaults>
</compile_context>

<pallas_src>
import functools

import jax
import jax.numpy as jnp
from jax.experimental import pallas as pl
from jax.experimental.pallas import tpu as pltpu

HIDDEN = 100        # hidden size of the original module
HIDDEN_PAD = 128    # zero-padded hidden size per branch -> fused hidden = 256

_SUBLANE = 16       # row granularity (bf16 sublane packing)
_VMEM_BUDGET = 30 * 2 ** 20   # conservative tile budget, fits all generations


def _round_up(x, m):
    return ((x + m - 1) // m) * m


def _lane_cols(c):
    """Columns occupied in VMEM after lane padding (last dim pads to 128)."""
    return _round_up(max(int(c), 1), 128)


def dueling_kernel(state_ref, action_ref, ws_ref, wa_ref, b_ref, wo_ref,
                   bo_ref, out_ref):
    """One batch tile:  out = relu(state@Ws + action@Wa + b) @ wo_col + bo."""
    # Fused hidden layer: columns [0:128) = advantage branch (fc1 on
    # cat(state, action)), columns [128:256) = value branch (fc2 on state;
    # its action-rows are zero).  bf16 operands, f32 accumulation; the
    # state/action concat is never materialized.
    h = jnp.dot(state_ref[...], ws_ref[...],
                preferred_element_type=jnp.float32)
    h = h + jnp.dot(action_ref[...], wa_ref[...],
                    preferred_element_type=jnp.float32)
    h = jnp.maximum(h + b_ref[...], 0.0)

    # Fused heads as a single K=256 MXU matmul against the (256, 1) fused
    # head column (f32), plus the fused scalar bias held in SMEM.
    out_ref[...] = (jnp.dot(h, wo_ref[...],
                            preferred_element_type=jnp.float32)
                    + bo_ref[0])


def pack_params(p, state_dim, action_dim, hidden=HIDDEN, hidden_pad=HIDDEN_PAD):
    """Fuse + zero-pad the raw (module-layout) parameters once, outside the kernel."""
    pad_cols = hidden_pad - hidden

    def pad_w(w):                                    # (in, H) -> (in, Hp)
        return jnp.pad(w, ((0, 0), (0, pad_cols)))

    def pad_b(b):                                    # (1, H) -> (1, Hp)
        return jnp.pad(b, ((0, 0), (0, pad_cols)))

    def pad_head_col(w):                             # (H, 1) -> (Hp, 1)
        return jnp.pad(w, ((0, pad_cols), (0, 0)))

    w1, w2 = p["w1"], p["w2"]
    # Hidden weights in bf16 (MXU-native), biases / head in f32.
    ws = jnp.concatenate([pad_w(w1[:state_dim]), pad_w(w2)],
                         axis=1).astype(jnp.bfloat16)                           # (S, 2*Hp)
    wa = jnp.concatenate(
        [pad_w(w1[state_dim:]),
         jnp.zeros((action_dim, hidden_pad), jnp.float32)],
        axis=1).astype(jnp.bfloat16)                                            # (A, 2*Hp)
    b_big = jnp.concatenate([pad_b(p["b1"]), pad_b(p["b2"])],
                            axis=1).astype(jnp.float32)                         # (1, 2*Hp)
    wo_big = jnp.concatenate([pad_head_col(p["wo"]), pad_head_col(p["wo2"])],
                             axis=0).astype(jnp.float32)                        # (2*Hp, 1)
    bo_big = (p["bo"] + p["bo2"]).reshape((1,)).astype(jnp.float32)             # (1,)
    return {"ws": ws, "wa": wa, "b": b_big, "wo": wo_big, "bo": bo_big}


@functools.partial(jax.jit, static_argnames=("block_b",))
def dueling_net1_forward(state, action, packed, *, block_b=4096):
    """state: (B, S), action: (B, A), packed = pack_params(...) -> (B, 1) f32."""
    B, S = state.shape
    A = action.shape[1]
    H2 = packed["ws"].shape[1]                       # fused hidden = 2 * HIDDEN_PAD

    # bf16 activations: halves HBM traffic and VMEM tile footprint.
    state = state.astype(jnp.bfloat16)
    action = action.astype(jnp.bfloat16)

    # --- Tile sizing against the LANE-PADDED VMEM footprint -----------------
    # Per batch row, per double-buffered input/output tile + in-kernel f32 h.
    per_row_bytes = (2 * (_lane_cols(S) * 2          # state tile  (bf16, x2 bufs)
                          + _lane_cols(A) * 2        # action tile (bf16, x2 bufs)
                          + _lane_cols(1) * 4)       # output tile (f32,  x2 bufs)
                     + H2 * 4)                       # f32 hidden activation
    weights_bytes = 2 * ((S + A) * H2 * 2            # ws + wa (bf16, x2 bufs)
                         + H2 * 4 + H2 * 4 + 512)    # b, wo, bo + slack
    rows_cap = max(_SUBLANE,
                   ((_VMEM_BUDGET - weights_bytes) // per_row_bytes)
                   // _SUBLANE * _SUBLANE)

    tb = min(block_b, _round_up(B, _SUBLANE), rows_cap)
    # Keep grid_b >= 2 for large batches so the "parallel" axis can shard
    # across both v7x TensorCores (one extra grid step is noise on v5e/v6e).
    if B >= 2048:
        tb = min(tb, _round_up(pl.cdiv(B, 2), _SUBLANE))
    tb = max(_SUBLANE, tb)

    grid_b = pl.cdiv(B, tb)
    b_pad = grid_b * tb
    if b_pad != B:
        state = jnp.pad(state, ((0, b_pad - B), (0, 0)))
        action = jnp.pad(action, ((0, b_pad - B), (0, 0)))

    # Explicit scoped-VMEM limit sized for the lane-padded tiles (v5e's
    # default is only 16 MiB); capped well under v7x's 64 MiB physical.
    footprint = tb * per_row_bytes + weights_bytes + (2 << 20)
    vmem_limit = int(min(48 * 2 ** 20, max(32 * 2 ** 20, footprint)))

    out = pl.pallas_call(
        dueling_kernel,
        out_shape=jax.ShapeDtypeStruct((b_pad, 1), jnp.float32),
        grid=(grid_b,),
        in_specs=[
            pl.BlockSpec((tb, S), lambda i: (i, 0)),            # state tile (bf16)
            pl.BlockSpec((tb, A), lambda i: (i, 0)),            # action tile (bf16)
            pl.BlockSpec((S, H2), lambda i: (0, 0)),            # fused state-rows weight
            pl.BlockSpec((A, H2), lambda i: (0, 0)),            # fused action-rows weight
            pl.BlockSpec((1, H2), lambda i: (0, 0)),            # fused hidden bias (f32)
            pl.BlockSpec((H2, 1), lambda i: (0, 0)),            # fused head column (f32)
            pl.BlockSpec(memory_space=pltpu.MemorySpace.SMEM),  # fused head bias scalar
        ],
        out_specs=pl.BlockSpec((tb, 1), lambda i: (i, 0)),
        compiler_params=pltpu.CompilerParams(
            dimension_semantics=("parallel",),
            vmem_limit_bytes=vmem_limit),
    )(state, action, packed["ws"], packed["wa"], packed["b"], packed["wo"],
      packed["bo"])
    return out[:B]


def init_params(key, state_dim, action_dim, hidden=HIDDEN):
    """Deterministic init mirroring the module: weights ~ N(0, 0.1),
    biases ~ U(-1/sqrt(fan_in), 1/sqrt(fan_in)) (PyTorch Linear default).
    Weights stored as (in_features, out_features) so math is x @ W + b."""
    ks = jax.random.split(key, 8)

    def w(k, fan_in, fan_out):
        return (0.1 * jax.random.normal(k, (fan_in, fan_out))).astype(jnp.float32)

    def b(k, fan_in, fan_out):
        bound = 1.0 / jnp.sqrt(fan_in)
        return jax.random.uniform(
            k, (1, fan_out), minval=-bound, maxval=bound).astype(jnp.float32)

    return {
        "w1": w(ks[0], state_dim + action_dim, hidden),
        "b1": b(ks[1], state_dim + action_dim, hidden),
        "wo": w(ks[2], hidden, 1),
        "bo": b(ks[3], hidden, 1),
        "w2": w(ks[4], state_dim, hidden),
        "b2": b(ks[5], state_dim, hidden),
        "wo2": w(ks[6], hidden, 1),
        "bo2": b(ks[7], hidden, 1),
    }


def reference_forward(state, action, p):
    """Pure-JAX mirror of the PyTorch module (unfused, f32)."""
    x = jnp.concatenate([state, action], axis=-1)
    a = jnp.maximum(x @ p["w1"] + p["b1"], 0.0) @ p["wo"] + p["bo"]
    v = jnp.maximum(state @ p["w2"] + p["b2"], 0.0) @ p["wo2"] + p["bo2"]
    return a + v


if __name__ == "__main__":
    key = jax.random.PRNGKey(0)
    k_state, k_action, k_params = jax.random.split(key, 3)

    B, STATE_DIM, ACTION_DIM = 8, 16, 8
    state = jax.random.normal(k_state, (B, STATE_DIM), dtype=jnp.float32)
    action = jax.random.normal(k_action, (B, ACTION_DIM), dtype=jnp.float32)
    params = init_params(k_params, STATE_DIM, ACTION_DIM)

    # One-time (wrapper-side) fusion / padding / bf16 cast of the parameters.
    packed = pack_params(params, STATE_DIM, ACTION_DIM)

    out = dueling_net1_forward(state, action, packed)
    out = jax.block_until_ready(out)

    ref = reference_forward(state, action, params)
    assert out.shape == (B, 1)
    # bf16 matmul operands (f32 accumulation) vs. f32 reference: loose tol.
    assert jnp.allclose(out, ref, atol=5e-2, rtol=5e-2), (
        float(jnp.max(jnp.abs(out - ref))))

    print("KERNEL_OK")
</pallas_src>

<mosaic_0001>
module attributes {stable_mosaic.version = 11 : i64} {
  func.func @dueling_kernel(%arg0: i32, %arg1: memref<16x16xbf16, #tpu.memory_space<vmem>>, %arg2: memref<16x8xbf16, #tpu.memory_space<vmem>>, %arg3: memref<16x256xbf16, #tpu.memory_space<vmem>>, %arg4: memref<8x256xbf16, #tpu.memory_space<vmem>>, %arg5: memref<1x256xf32, #tpu.memory_space<vmem>>, %arg6: memref<256x1xf32, #tpu.memory_space<vmem>>, %arg7: memref<1xf32, #tpu.memory_space<smem>>, %arg8: memref<16x1xf32, #tpu.memory_space<vmem>>) attributes {dimension_semantics = [#tpu.dimension_semantics<parallel>], iteration_bounds = array<i64: 1>, scalar_prefetch = 0 : i64, scratch_operands = 0 : i64, tpu.core_type = #tpu.core_type<tc>, window_params = [{transform_indices = @transform_0, window_bounds = array<i64: 16, 16>}, {transform_indices = @transform_1, window_bounds = array<i64: 16, 8>}, {pipeline_mode = #tpu.pipeline_mode<synchronous>, transform_indices = @transform_2, window_bounds = array<i64: 16, 256>}, {pipeline_mode = #tpu.pipeline_mode<synchronous>, transform_indices = @transform_3, window_bounds = array<i64: 8, 256>}, {pipeline_mode = #tpu.pipeline_mode<synchronous>, transform_indices = @transform_4, window_bounds = array<i64: 1, 256>}, {pipeline_mode = #tpu.pipeline_mode<synchronous>, transform_indices = @transform_5, window_bounds = array<i64: 256, 1>}, {transform_indices = @transform_6, window_bounds = array<i64: 1>}, {transform_indices = @transform_7, window_bounds = array<i64: 16, 1>}]} {
    %c0 = arith.constant 0 : index
    %c0_0 = arith.constant 0 : index
    %0 = vector.load %arg1[%c0, %c0_0] : memref<16x16xbf16, #tpu.memory_space<vmem>>, vector<16x16xbf16>
    %c0_1 = arith.constant 0 : index
    %c0_2 = arith.constant 0 : index
    %1 = vector.load %arg3[%c0_1, %c0_2] : memref<16x256xbf16, #tpu.memory_space<vmem>>, vector<16x256xbf16>
    %cst = arith.constant dense<0.000000e+00> : vector<16x256xf32>
    %2 = tpu.matmul %0, %1, %cst {dimension_numbers = #tpu.dot_dimension_numbers<[1], [0], [0], [1], [0, 0, 1, 1], [], []>} : vector<16x16xbf16>, vector<16x256xbf16>, vector<16x256xf32> -> vector<16x256xf32>
    %c0_3 = arith.constant 0 : index
    %c0_4 = arith.constant 0 : index
    %3 = vector.load %arg2[%c0_3, %c0_4] : memref<16x8xbf16, #tpu.memory_space<vmem>>, vector<16x8xbf16>
    %c0_5 = arith.constant 0 : index
    %c0_6 = arith.constant 0 : index
    %4 = vector.load %arg4[%c0_5, %c0_6] : memref<8x256xbf16, #tpu.memory_space<vmem>>, vector<8x256xbf16>
    %cst_7 = arith.constant dense<0.000000e+00> : vector<16x256xf32>
    %5 = tpu.matmul %3, %4, %cst_7 {dimension_numbers = #tpu.dot_dimension_numbers<[1], [0], [0], [1], [0, 0, 1, 1], [], []>} : vector<16x8xbf16>, vector<8x256xbf16>, vector<16x256xf32> -> vector<16x256xf32>
    %6 = arith.addf %2, %5 : vector<16x256xf32>
    %c0_8 = arith.constant 0 : index
    %c0_9 = arith.constant 0 : index
    %7 = vector.load %arg5[%c0_8, %c0_9] : memref<1x256xf32, #tpu.memory_space<vmem>>, vector<1x256xf32>
    %8 = vector.broadcast %7 : vector<1x256xf32> to vector<16x256xf32>
    %9 = arith.addf %6, %8 : vector<16x256xf32>
    %cst_10 = arith.constant 0.000000e+00 : f32
    %10 = vector.broadcast %cst_10 : f32 to vector<16x256xf32>
    %11 = arith.maximumf %9, %10 : vector<16x256xf32>
    %c0_11 = arith.constant 0 : index
    %c0_12 = arith.constant 0 : index
    %12 = vector.load %arg6[%c0_11, %c0_12] : memref<256x1xf32, #tpu.memory_space<vmem>>, vector<256x1xf32>
    %cst_13 = arith.constant dense<0.000000e+00> : vector<16x1xf32>
    %13 = tpu.matmul %11, %12, %cst_13 {dimension_numbers = #tpu.dot_dimension_numbers<[1], [0], [0], [1], [0, 0, 1, 1], [], []>} : vector<16x256xf32>, vector<256x1xf32>, vector<16x1xf32> -> vector<16x1xf32>
    %c0_14 = arith.constant 0 : index
    %14 = memref.load %arg7[%c0_14] : memref<1xf32, #tpu.memory_space<smem>>
    %15 = vector.broadcast %14 : f32 to vector<16x1xf32>
    %16 = arith.addf %13, %15 : vector<16x1xf32>
    %c0_15 = arith.constant 0 : index
    %c0_16 = arith.constant 0 : index
    %17 = vector.load %arg8[%c0_15, %c0_16] : memref<16x1xf32, #tpu.memory_space<vmem>>, vector<16x1xf32>
    tpu.vector_store %arg8[%c0_15, %c0_16], %16 {strides = array<i32>} : memref<16x1xf32, #tpu.memory_space<vmem>>, vector<16x1xf32>,
    return
  }
  func.func @transform_0(%arg0: i32) -> (i32, i32) {
    %c0_i32 = arith.constant 0 : i32
    %c0_i32_0 = arith.constant 0 : i32
    return %arg0, %c0_i32 : i32, i32
  }
  func.func @transform_1(%arg0: i32) -> (i32, i32) {
    %c0_i32 = arith.constant 0 : i32
    %c0_i32_0 = arith.constant 0 : i32
    return %arg0, %c0_i32 : i32, i32
  }
  func.func @transform_2(%arg0: i32) -> (i32, i32) {
    %c0_i32 = arith.constant 0 : i32
    %c0_i32_0 = arith.constant 0 : i32
    %c0_i32_1 = arith.constant 0 : i32
    return %c0_i32, %c0_i32_0 : i32, i32
  }
  func.func @transform_3(%arg0: i32) -> (i32, i32) {
    %c0_i32 = arith.constant 0 : i32
    %c0_i32_0 = arith.constant 0 : i32
    %c0_i32_1 = arith.constant 0 : i32
    return %c0_i32, %c0_i32_0 : i32, i32
  }
  func.func @transform_4(%arg0: i32) -> (i32, i32) {
    %c0_i32 = arith.constant 0 : i32
    %c0_i32_0 = arith.constant 0 : i32
    %c0_i32_1 = arith.constant 0 : i32
    return %c0_i32, %c0_i32_0 : i32, i32
  }
  func.func @transform_5(%arg0: i32) -> (i32, i32) {
    %c0_i32 = arith.constant 0 : i32
    %c0_i32_0 = arith.constant 0 : i32
    %c0_i32_1 = arith.constant 0 : i32
    return %c0_i32, %c0_i32_0 : i32, i32
  }
  func.func @transform_6(%arg0: i32) -> i32 {
    %c0_i32 = arith.constant 0 : i32
    %c0_i32_0 = arith.constant 0 : i32
    return %c0_i32 : i32
  }
  func.func @transform_7(%arg0: i32) -> (i32, i32) {
    %c0_i32 = arith.constant 0 : i32
    %c0_i32_0 = arith.constant 0 : i32
    return %arg0, %c0_i32 : i32, i32
  }
}

</mosaic_0001>

<bundles_post_ra>
// kernel: dueling_net1_forward.1
= control target key start
LH: loop header
LB: loop body
LE: loop exit
PB: predicated region body
PF: predicated region fallthrough
CT: control target
= control target key end

     0   :  { %vm49_vm0 = vcmask 1043456   ;;  %v388_v1 = vmov 0   ;;  %vm45_vm1 = vcmask 64512   ;;  %vm114_vm2 = vcmask 130048   ;;  %s552_s3 = inlined_call_operand.vmem [shape: bf16[8,256], index: 3, kind: input, shape index: {}]   ;;  %s553_s1 = inlined_call_operand.vmem [shape: bf16[16,8], index: 1, kind: input, shape index: {}]   ;;  %s554_s2 = inlined_call_operand.vmem [shape: bf16[16,256], index: 2, kind: input, shape index: {}]   ;;  %s555_s5 = inlined_call_operand.vmem [shape: f32[256,1], index: 5, kind: input, shape index: {}]   ;;  %s556_s0 = inlined_call_operand.vmem [shape: bf16[16,16], index: 0, kind: input, shape index: {}]   ;;  %s557_s4 = inlined_call_operand.vmem [shape: f32[1,256], index: 4, kind: input, shape index: {}]   ;;  %s558_s6 = inlined_call_operand.<no memory space> [shape: f32[1], index: 6, kind: input, shape index: {}]   ;;  %s559_s7 = inlined_call_operand.vmem [shape: f32[16,1], index: 7, kind: output, shape index: {}]  }
   0x1   :  { %v34_v0 = vld [vmem:[%s552_s3] sm:$0xff]  ;;  %88 = vmatprep.mubr.bf16.mxu0 %v388_v1  ;;  %v198_v9 = vld [vmem:[%s555_s5 + $0x88] sm:$0xff]  ;;  %v199_v14 = vld [vmem:[%s555_s5 + $0x90] sm:$0xff]  ;;  %v163_v57 = vlaneseq  ;;  %vm290_vm3 = vcmask 7168  }
   0x2   :  { %v299_v2 = vcombine.high %v34_v0, %v34_v0  ;;  %v298_v3 = vcombine.low %v34_v0, %v34_v0  ;;  %v383_v4 = vld [vmem:[%s553_s1] sm:$0xff]   ;;  %v182_v11 = vld [vmem:[%s555_s5 + $0x8] sm:$0xff]  ;;  %v200_v15 = vld [vmem:[%s555_s5 + $0x98] sm:$0xff] }
   0x3   :  { %v386_v5 = vld [vmem:[%s554_s2 + $0x4] ss:$8 sps:$4 sm:$0xff]   ;;  %v384_v7 = vld [vmem:[%s554_s2] ss:$8 sps:$4 sm:$0xff]   ;;  %v348_v16 = vpack.c.bf16 %v200_v15, %v199_v14  ;;  %v183_v17 = vld [vmem:[%s555_s5 + $0x10] sm:$0xff]  ;;  %v164_v58 = vshrl.u32 %v163_v57, 7 }
   0x4   :  { %300 = vmatprep.subr.msk.bf16.mxu0 %vm49_vm0, %v299_v2  ;;  %v51_v6 = vsel %vm49_vm0, %v298_v3, 0  ;;  %v197_v8 = vld [vmem:[%s555_s5 + $0x80] sm:$0xff]  ;;  %v184_v18 = vld [vmem:[%s555_s5 + $0x18] sm:$0xff]  ;;  %v202_v20 = vld [vmem:[%s555_s5 + $0xa8] sm:$0xff] }
   0x5   :  { %57 = vmatpush1.bf16.msra.mxu0 %v51_v6  ;;  %v181_v10 = vld [vmem:[%s555_s5] sm:$0xff]  ;;  %v344_v12 = vpack.c.bf16 %v198_v9, %v197_v8  ;;  %v350_v21 = vpack.c.bf16 %v184_v18, %v183_v17  ;;  %v186_v24 = vld [vmem:[%s555_s5 + $0x28] sm:$0xff]  ;;  %v203_v25 = vld [vmem:[%s555_s5 + $0xb0] sm:$0xff]  ;;  %v165_v59 = vsub.s32 0, %v164_v58  ;;  %v169_v61 = vsub.s32 1, %v164_v58 }
   0x6   :  { %118 = vmatprep.subr.bf16.mxu0 %v386_v5  ;;  %v346_v13 = vpack.c.bf16 %v182_v11, %v181_v10  ;;  %v201_v19 = vld [vmem:[%s555_s5 + $0xa0] sm:$0xff]  ;;  %v204_v26 = vld [vmem:[%s555_s5 + $0xb8] sm:$0xff]  ;;  %v187_v29 = vld [vmem:[%s555_s5 + $0x30] sm:$0xff] }
   0x7   :  { %345 = vmatprep.subr.bf16.mxu1 %v344_v12  ;;  %v352_v22 = vpack.c.bf16 %v202_v20, %v201_v19  ;;  %v185_v23 = vld [vmem:[%s555_s5 + $0x20] sm:$0xff]  ;;  %v356_v28 = vpack.c.bf16 %v204_v26, %v203_v25  ;;  %v188_v30 = vld [vmem:[%s555_s5 + $0x38] sm:$0xff]  ;;  %v206_v33 = vld [vmem:[%s555_s5 + $0xc8] sm:$0xff] }
   0x8   :  { %301 = vmatmul.mubr.msk.bf16.vlgmr.msra.gmra.mrb[0].mxu0 %vm45_vm1, %v383_v4  ;;  %347 = vmatpush3.bf16.msra.mxu1 %v346_v13  ;;  %v354_v27 = vpack.c.bf16 %v186_v24, %v185_v23  ;;  %v387_v31 = vld [vmem:[%s556_s0] sm:$0xff]   ;;  %v358_v34 = vpack.c.bf16 %v188_v30, %v187_v29  ;;  %v190_v37 = vld [vmem:[%s555_s5 + $0x48] sm:$0xff]  ;;  %v207_v38 = vld [vmem:[%s555_s5 + $0xd0] sm:$0xff]  ;;  %v214_v13 = vstv %s558_s6 }
   0x9   :  { %119 = vmatpush1.bf16.msra.mxu0 %v384_v7  ;;  %150 = vmatprep.mubr.bf16.mxu0 %v388_v1  ;;  %v205_v32 = vld [vmem:[%s555_s5 + $0xc0] sm:$0xff]  ;;  %v208_v39 = vld [vmem:[%s555_s5 + $0xd8] sm:$0xff]  ;;  %v191_v42 = vld [vmem:[%s555_s5 + $0x50] sm:$0xff] }
   0xa   :  { %349 = vmatprep.subr.bf16.mxu1 %v348_v16  ;;  %v360_v35 = vpack.c.bf16 %v206_v33, %v205_v32  ;;  %v189_v36 = vld [vmem:[%s555_s5 + $0x40] sm:$0xff]  ;;  %v364_v41 = vpack.c.bf16 %v208_v39, %v207_v38  ;;  %v192_v43 = vld [vmem:[%s555_s5 + $0x58] sm:$0xff]  ;;  %v210_v45 = vld [vmem:[%s555_s5 + $0xe8] sm:$0xff] }
   0xb   :  { %v362_v40 = vpack.c.bf16 %v190_v37, %v189_v36  ;;  %v209_v44 = vld [vmem:[%s555_s5 + $0xe0] sm:$0xff]  ;;  %v366_v46 = vpack.c.bf16 %v192_v43, %v191_v42  ;;  %v194_v49 = vld [vmem:[%s555_s5 + $0x68] sm:$0xff]  ;;  %v211_v51 = vld [vmem:[%s555_s5 + $0xf0] sm:$0xff] }
   0xc   :  { %351 = vmatpush3.bf16.msra.mxu1 %v350_v21  ;;  %v368_v47 = vpack.c.bf16 %v210_v45, %v209_v44  ;;  %v193_v48 = vld [vmem:[%s555_s5 + $0x60] sm:$0xff]  ;;  %v212_v52 = vld [vmem:[%s555_s5 + $0xf8] sm:$0xff]  ;;  %v195_v54 = vld [vmem:[%s555_s5 + $0x70] sm:$0xff] }
   0xd   :  { %353 = vmatprep.subr.bf16.mxu1 %v352_v22  ;;  %v370_v50 = vpack.c.bf16 %v194_v49, %v193_v48  ;;  %v372_v53 = vpack.c.bf16 %v212_v52, %v211_v51  ;;  %v196_v55 = vld [vmem:[%s555_s5 + $0x78] sm:$0xff]  ;;  %v161_v60 = vld [vmem:[%s557_s4] sm:$0x3] }
   0xe   :  { %v374_v56 = vpack.c.bf16 %v196_v55, %v195_v54  ;;  %v166_v62 = vrot.slane %v161_v60, %v165_v59  ;;  %v170_v63 = vrot.slane %v161_v60, %v169_v61 }
  0x10   :  { %355 = vmatpush3.bf16.msra.mxu1 %v354_v27 }
  0x11   :  { %357 = vmatprep.subr.bf16.mxu1 %v356_v28 }
  0x14   :  { %305 = vmatmul.mubr.msk.bf16.vlgmr.msra.gmra.mrb[0].mxu0 %vm114_vm2, %v387_v31  ;;  %359 = vmatpush3.bf16.msra.mxu1 %v358_v34 }
  0x15   :  { %361 = vmatprep.subr.bf16.mxu1 %v360_v35 }
  0x18   :  { %363 = vmatpush3.bf16.msra.mxu1 %v362_v40 }
  0x19   :  { %365 = vmatprep.subr.bf16.mxu1 %v364_v41 }
  0x1c   :  { %367 = vmatpush3.bf16.msra.mxu1 %v366_v46 }
  0x1d   :  { %369 = vmatprep.subr.bf16.mxu1 %v368_v47 }
  0x20   :  { %371 = vmatpush3.bf16.msra.mxu1 %v370_v50 }
  0x21   :  { %373 = vmatprep.subr.bf16.mxu1 %v372_v53 }
  0x24   :  { %375 = vmatpush3.bf16.msra.mxu1 %v374_v56 }
  0xe7   :  { %v152_v0 = vpop.f32.mrb[0].mxu0 }
  0xe8   :  { %v173_v1 = vadd.f32 %v166_v62, %v152_v0  ;;  %v154_v2 = vpop.f32.mrb[1].mxu0 }
  0xe9   :  { %v156_v3 = vpop.f32.mrb[2].mxu0  ;;  %v174_v4 = vadd.f32 %v170_v63, %v154_v2 }
  0xea   :  { %v158_v5 = vpop.f32.mrb[3].mxu0  ;;  %v177_v8 = vmax.f32 %v173_v1, 0.0  ;;  %v175_v9 = vadd.f32 %v166_v62, %v156_v3 }
  0xeb   :  { %v176_v6 = vadd.f32 %v170_v63, %v158_v5  ;;  %v178_v7 = vmax.f32 %v174_v4, 0.0 }
  0xec   :  { %v179_v11 = vmax.f32 %v175_v9, 0.0 }
  0xed   :  { %v180_v10 = vmax.f32 %v176_v6, 0.0  ;;  %279 = vmatprep.mubr.f32.mxu1 %v178_v7 }
  0xee   :  { %280 = vmatmul.mubr.f32.vlgmr.msra.gmra.mrb[0].mxu1 %v177_v8 }
  0xef   :  { %284 = vmatprep.mubr.f32.mxu1 %v180_v10 }
  0xf2   :  { %285 = vmatmul.mubr.f32.gmra.mrb[2].mxu1 %v179_v11 }
 0x1c1   :  { %v338_v12 = vpop.f32.mrb[0].mxu1 }
 0x1c2   :  { %v339_v14 = vpop.f32.mrb[1].mxu1 }
 0x1c3   :  { %v340_v15 = vadd.f32 %v339_v14, %v338_v12 }
 0x1c5   :  { %v282_v16 = vadd.f32 %v340_v15, %v214_v13  ;;  %v341_v17 = vpop.f32.mrb[2].mxu1 }
 0x1c6   :  { %v342_v18 = vpop.f32.mrb[3].mxu1 }
 0x1c7   :  { %291 = vst.msk [vmem:[%s559_s7] sm:$0xff] %vm290_vm3, %v282_v16  ;;  %v343_v19 = vadd.f32 %v342_v18, %v341_v17 }
 0x1c9   :  { %v287_v20 = vadd.f32 %v343_v19, %v214_v13 }
 0x1cb   :  { %292 = vst.msk [vmem:[%s559_s7 + $0x8] sm:$0xff] %vm290_vm3, %v287_v20 }

</bundles_post_ra>
